<compile_context>
chip_gen: v6e
topology: v6e:2x2x1
jax: 0.10.0
libtpu: 0.0.40
codegen_flags: <defaults>
</compile_context>

<pallas_src>
import functools

import jax
import jax.numpy as jnp
from jax.experimental import pallas as pl
from jax.experimental.pallas import tpu as pltpu


# ---------------------------------------------------------------------------
# VMEM budget helpers (generation-aware: 128 MiB on v5e/v6e, 64 MiB/TC on v7x)
# ---------------------------------------------------------------------------

def _vmem_capacity_bytes():
    try:
        info = pltpu.get_tpu_info()
        cap = int(getattr(info, "vmem_capacity_bytes", 0) or 0)
        if cap > 0:
            return cap
    except Exception:
        pass
    return 64 << 20  # conservative fallback: v7x per-TensorCore VMEM


def _vmem_budget_bytes():
    # ~20% headroom for compiler-internal scratch / semaphores:
    # ~51 MiB on v7x, ~102 MiB on v5e/v6e.
    return (_vmem_capacity_bytes() * 4) // 5


def _round_down(v, q):
    return (v // q) * q


def _choose_pool_tiles(n, c, hw, itemsize, budget):
    """Pick (n_tile, c_tile, hw_tile) for the pooling kernel.

    Block constraints: n_tile == N or mult-of-8; c_tile == C or mult-of-128;
    hw_tile == HW or mult-of-128.  Preference: keep HW whole (contiguous HBM
    runs), shrink N first, then C, and only tile HW as a last resort.
    """
    usable = max(budget - (4 << 20), 4 << 20)

    def fits(nt, ct, ht):
        # double-buffered x block + double-buffered (f32) pooled output block
        return 2 * nt * ct * (ht * itemsize + 4) <= usable

    def cands(dim, q):
        vals = [dim]
        v = _round_down(dim // 2, q)
        while v >= q:
            if v not in vals:
                vals.append(v)
            v = _round_down(v // 2, q)
        if dim > q and q not in vals:
            vals.append(q)
        return vals

    for ct in cands(c, 128):          # full C first, then 128-aligned halves
        for nt in cands(n, 8):        # shrink N before shrinking C
            if fits(nt, ct, hw):
                return nt, ct, hw

    # Last resort: minimum N/C tiles, tile the HW (reduction) axis.
    nt = n if n <= 8 else 8
    ct = c if c <= 128 else 128
    per_buf = max(usable // 2 - nt * ct * 4, nt * ct * itemsize * 128)
    ht = max(_round_down(per_buf // (nt * ct * itemsize), 128), 128)
    if ht >= hw:
        ht = hw
    return nt, ct, ht


# ---------------------------------------------------------------------------
# Kernel 1: global average pooling over (N, C, HW), HBM-bound
# ---------------------------------------------------------------------------

def _pool_kernel(x_ref, o_ref, *, hw, hw_tile, inv_hw):
    # x_ref: (n_tile, c_tile, hw_tile) slab of x viewed as (N, C, HW)
    # o_ref: (n_tile, c_tile) f32 pooled output, resident across the HW axis
    hi = pl.program_id(2)

    @pl.when(hi == 0)
    def _():
        o_ref[...] = jnp.zeros_like(o_ref)

    xb = x_ref[...].astype(jnp.float32)

    if hw % hw_tile != 0:
        # Ragged last HW tile: mask out-of-range columns in-kernel instead of
        # padding x in HBM.  Cheap VPU work; those slots are idle here.
        col = jax.lax.broadcasted_iota(jnp.int32, xb.shape, 2)
        xb = jnp.where(hi * hw_tile + col < hw, xb, 0.0)

    # Lane-axis reduce goes to the XLU, which is idle in this HBM-bound kernel.
    o_ref[...] += jnp.sum(xb, axis=-1)

    @pl.when(hi == pl.num_programs(2) - 1)
    def _():
        o_ref[...] *= inv_hw          # adaptive_avg_pool2d((1,1)): one scale


def _global_avg_pool(x_nchw, *, n_tile=None, c_tile=None, hw_tile=None):
    n, c, h, w = x_nchw.shape
    hw = h * w
    x = x_nchw.reshape(n, c, hw)      # contiguous collapse: no transpose, no copy
    itemsize = jnp.dtype(x.dtype).itemsize

    ant, act, aht = _choose_pool_tiles(n, c, hw, itemsize, _vmem_budget_bytes())
    n_tile = ant if n_tile is None else n_tile
    c_tile = act if c_tile is None else c_tile
    hw_tile = aht if hw_tile is None else hw_tile

    assert n_tile == n or n_tile % 8 == 0, "n_tile must be N or a multiple of 8"
    assert c_tile == c or c_tile % 128 == 0, "c_tile must be C or a multiple of 128"
    assert hw_tile == hw or hw_tile % 128 == 0, "hw_tile must be HW or a multiple of 128"

    grid = (pl.cdiv(n, n_tile), pl.cdiv(c, c_tile), pl.cdiv(hw, hw_tile))

    kernel = functools.partial(_pool_kernel, hw=hw, hw_tile=hw_tile,
                               inv_hw=float(1.0 / hw))

    cap = _vmem_capacity_bytes()
    need = 2 * n_tile * c_tile * (hw_tile * itemsize + 4) + (4 << 20)
    vmem_limit = int(min(max(need, 16 << 20), cap - (4 << 20)))

    cost = pl.CostEstimate(
        flops=n * c * hw,
        transcendentals=0,
        bytes_accessed=n * c * hw * itemsize + n * c * 4,
    )

    return pl.pallas_call(
        kernel,
        out_shape=jax.ShapeDtypeStruct((n, c), jnp.float32),
        grid_spec=pltpu.PrefetchScalarGridSpec(
            num_scalar_prefetch=0,
            grid=grid,
            in_specs=[pl.BlockSpec((n_tile, c_tile, hw_tile),
                                   lambda ni, ci, hi: (ni, ci, hi))],
            out_specs=pl.BlockSpec((n_tile, c_tile),
                                   lambda ni, ci, hi: (ni, ci)),
        ),
        compiler_params=pltpu.CompilerParams(
            # Parallel N/C axes -> Mosaic can shard blocks across both v7x
            # TensorCores; HW is the (optional) reduction axis.
            dimension_semantics=("parallel", "parallel", "arbitrary"),
            vmem_limit_bytes=vmem_limit,
        ),
        cost_estimate=cost,
    )(x)


# ---------------------------------------------------------------------------
# Kernel 2: fc1 -> BatchNorm1d (training-mode batch stats) -> ReLU -> fc2
# Gridless call: every operand (incl. weights) is resident in VMEM exactly once.
# ---------------------------------------------------------------------------

def _mlp_bn_kernel(x_ref, w1_ref, b1_ref, g_ref, beta_ref, w2_ref, b2_ref, o_ref):
    h = jnp.dot(x_ref[...], w1_ref[...],
                preferred_element_type=jnp.float32) + b1_ref[...]

    mean = jnp.mean(h, axis=0, keepdims=True)
    var = jnp.mean(jnp.square(h - mean), axis=0, keepdims=True)
    h = (h - mean) * jax.lax.rsqrt(var + 1e-5)
    h = h * g_ref[...] + beta_ref[...]

    h = jnp.maximum(h, 0.0)

    y = jnp.dot(h, w2_ref[...], preferred_element_type=jnp.float32) + b2_ref[...]
    o_ref[...] = y.astype(o_ref.dtype)


def _mlp_bn_head(pooled, params):
    w1, b1, gamma, beta, w2, b2 = params
    n, c = pooled.shape
    hid = w1.shape[1]
    out = w2.shape[1]

    weight_bytes = (c * hid + 3 * hid + hid * out + out) * 4
    cap = _vmem_capacity_bytes()
    need = weight_bytes + (n * c + n * out + 4 * n * hid) * 4 + (2 << 20)
    vmem_limit = int(min(max(need, 16 << 20), cap - (4 << 20)))

    cost = pl.CostEstimate(
        flops=2 * n * c * hid + 2 * n * hid * out + 8 * n * hid,
        transcendentals=hid,
        bytes_accessed=weight_bytes + (n * c + n * out) * 4,
    )

    return pl.pallas_call(
        _mlp_bn_kernel,
        out_shape=jax.ShapeDtypeStruct((n, out), jnp.float32),
        compiler_params=pltpu.CompilerParams(vmem_limit_bytes=vmem_limit),
        cost_estimate=cost,
    )(pooled, w1, b1, gamma, beta, w2, b2)


# ---------------------------------------------------------------------------
# Module forward
# ---------------------------------------------------------------------------

@functools.partial(jax.jit,
                   static_argnames=("with_avg_pool", "n_tile", "c_tile", "hw_tile"))
def nonlinear_neck_v2(x, params, *, with_avg_pool=True,
                      n_tile=None, c_tile=None, hw_tile=None):
    """x: (N, C, H, W) (or (N, C) if with_avg_pool=False). Returns (N, out)."""
    if with_avg_pool:
        pooled = _global_avg_pool(x, n_tile=n_tile, c_tile=c_tile, hw_tile=hw_tile)
    else:
        pooled = x.reshape(x.shape[0], -1).astype(jnp.float32)
    return _mlp_bn_head(pooled, params)


def init_params(key, in_channels, hid_channels, out_channels):
    """Matches _init_weights(init_linear='normal', std=0.01, bias=0)."""
    k1, k2 = jax.random.split(key)
    # PyTorch Linear stores weight as (out, in); pre-transpose to (in, out).
    w1 = (jax.random.normal(k1, (hid_channels, in_channels), jnp.float32) * 0.01).T
    b1 = jnp.zeros((1, hid_channels), jnp.float32)
    gamma = jnp.ones((1, hid_channels), jnp.float32)   # BN weight -> 1
    beta = jnp.zeros((1, hid_channels), jnp.float32)   # BN bias -> 0
    w2 = (jax.random.normal(k2, (out_channels, hid_channels), jnp.float32) * 0.01).T
    b2 = jnp.zeros((1, out_channels), jnp.float32)
    return (w1, b1, gamma, beta, w2, b2)


def _reference(x_nchw, params):
    w1, b1, gamma, beta, w2, b2 = params
    hp = jax.lax.Precision.HIGHEST
    pooled = jnp.mean(x_nchw, axis=(2, 3))
    h = jnp.dot(pooled, w1, precision=hp) + b1
    mean = jnp.mean(h, axis=0, keepdims=True)
    var = jnp.mean((h - mean) ** 2, axis=0, keepdims=True)
    h = (h - mean) / jnp.sqrt(var + 1e-5) * gamma + beta
    h = jnp.maximum(h, 0.0)
    return jnp.dot(h, w2, precision=hp) + b2


if __name__ == "__main__":
    key = jax.random.PRNGKey(0)
    kx, kp, kx2, kx3, kp3 = jax.random.split(key, 5)

    # --- Test 1: canonical small shapes, auto tiling (single block). --------
    N, C, H, W = 2, 4, 16, 16
    HID, OUT = 32, 16
    x = jax.random.normal(kx, (N, C, H, W), jnp.float32)
    params = init_params(kp, C, HID, OUT)

    xs = [x]                       # forward(x) takes a length-1 list
    assert len(xs) == 1
    y = jax.block_until_ready(nonlinear_neck_v2(xs[0], params))
    y_ref = _reference(xs[0], params)
    assert y.shape == (N, OUT)
    assert jnp.allclose(y, y_ref, atol=1e-5, rtol=1e-5), "mismatch (test 1)"

    # --- Test 2: ragged HW (15x15 = 225) with forced hw_tile=128: exercises
    # the multi-step HW reduction and the in-kernel last-tile mask (no pad). --
    x2 = jax.random.normal(kx2, (N, C, 15, 15), jnp.float32)
    y2 = jax.block_until_ready(nonlinear_neck_v2(x2, params, hw_tile=128))
    y2_ref = _reference(x2, params)
    assert jnp.allclose(y2, y2_ref, atol=1e-5, rtol=1e-5), "mismatch (test 2)"

    # --- Test 3: channel tiling (C=256 -> two 128-channel parallel blocks)
    # plus ragged HW (12x12 = 144 -> one full + one masked partial tile). -----
    N3, C3 = 4, 256
    x3 = jax.random.normal(kx3, (N3, C3, 12, 12), jnp.float32)
    params3 = init_params(kp3, C3, HID, OUT)
    y3 = jax.block_until_ready(
        nonlinear_neck_v2(x3, params3, c_tile=128, hw_tile=128))
    y3_ref = _reference(x3, params3)
    assert y3.shape == (N3, OUT)
    assert jnp.allclose(y3, y3_ref, atol=1e-4, rtol=1e-4), "mismatch (test 3)"

    print("KERNEL_OK")
</pallas_src>

<mosaic_0001>
module attributes {stable_mosaic.version = 11 : i64} {
  func.func @_pool_kernel(%arg0: i32, %arg1: i32, %arg2: i32, %arg3: memref<2x4x256xf32, #tpu.memory_space<vmem>>, %arg4: memref<2x4xf32, #tpu.memory_space<vmem>>) attributes {dimension_semantics = [#tpu.dimension_semantics<parallel>, #tpu.dimension_semantics<parallel>, #tpu.dimension_semantics<arbitrary>], iteration_bounds = array<i64: 1, 1, 1>, scalar_prefetch = 0 : i64, scratch_operands = 0 : i64, tpu.core_type = #tpu.core_type<tc>, window_params = [{transform_indices = @transform_0, window_bounds = array<i64: 2, 4, 256>}, {transform_indices = @transform_1, window_bounds = array<i64: 2, 4>}]} {
    %c0_i32 = arith.constant 0 : i32
    %0 = arith.cmpi eq, %arg2, %c0_i32 : i32
    %1 = arith.extui %0 : i1 to i32
    %c0_i32_0 = arith.constant 0 : i32
    %2 = arith.cmpi ne, %1, %c0_i32_0 : i32
    scf.if %2 {
      %cst_9 = arith.constant 0.000000e+00 : f32
      %11 = vector.broadcast %cst_9 : f32 to vector<2x4xf32>
      %c0_10 = arith.constant 0 : index
      %c0_11 = arith.constant 0 : index
      %12 = vector.load %arg4[%c0_10, %c0_11] : memref<2x4xf32, #tpu.memory_space<vmem>>, vector<2x4xf32>
      tpu.vector_store %arg4[%c0_10, %c0_11], %11 {strides = array<i32>} : memref<2x4xf32, #tpu.memory_space<vmem>>, vector<2x4xf32>,
    } else {
    }
    %c0 = arith.constant 0 : index
    %c0_1 = arith.constant 0 : index
    %c0_2 = arith.constant 0 : index
    %3 = vector.load %arg3[%c0, %c0_1, %c0_2] : memref<2x4x256xf32, #tpu.memory_space<vmem>>, vector<2x4x256xf32>
    %c0_3 = arith.constant 0 : index
    %c0_4 = arith.constant 0 : index
    %4 = vector.load %arg4[%c0_3, %c0_4] : memref<2x4xf32, #tpu.memory_space<vmem>>, vector<2x4xf32>
    %cst = arith.constant dense<0.000000e+00> : vector<2x4xf32>
    %5 = vector.multi_reduction <add>, %3, %cst [2] : vector<2x4x256xf32> to vector<2x4xf32>
    %6 = arith.addf %4, %5 : vector<2x4xf32>
    %c0_5 = arith.constant 0 : index
    %c0_6 = arith.constant 0 : index
    %7 = vector.load %arg4[%c0_5, %c0_6] : memref<2x4xf32, #tpu.memory_space<vmem>>, vector<2x4xf32>
    tpu.vector_store %arg4[%c0_5, %c0_6], %6 {strides = array<i32>} : memref<2x4xf32, #tpu.memory_space<vmem>>, vector<2x4xf32>,
    %c0_i32_7 = arith.constant 0 : i32
    %8 = arith.cmpi eq, %arg2, %c0_i32_7 : i32
    %9 = arith.extui %8 : i1 to i32
    %c0_i32_8 = arith.constant 0 : i32
    %10 = arith.cmpi ne, %9, %c0_i32_8 : i32
    scf.if %10 {
      %c0_9 = arith.constant 0 : index
      %c0_10 = arith.constant 0 : index
      %11 = vector.load %arg4[%c0_9, %c0_10] : memref<2x4xf32, #tpu.memory_space<vmem>>, vector<2x4xf32>
      %cst_11 = arith.constant 3.906250e-03 : f32
      %12 = vector.broadcast %cst_11 : f32 to vector<2x4xf32>
      %13 = arith.mulf %11, %12 : vector<2x4xf32>
      %c0_12 = arith.constant 0 : index
      %c0_13 = arith.constant 0 : index
      %14 = vector.load %arg4[%c0_12, %c0_13] : memref<2x4xf32, #tpu.memory_space<vmem>>, vector<2x4xf32>
      tpu.vector_store %arg4[%c0_12, %c0_13], %13 {strides = array<i32>} : memref<2x4xf32, #tpu.memory_space<vmem>>, vector<2x4xf32>,
    } else {
    }
    return
  }
  func.func @transform_0(%arg0: i32, %arg1: i32, %arg2: i32) -> (i32, i32, i32) {
    %c0_i32 = arith.constant 0 : i32
    return %arg0, %arg1, %arg2 : i32, i32, i32
  }
  func.func @transform_1(%arg0: i32, %arg1: i32, %arg2: i32) -> (i32, i32) {
    %c0_i32 = arith.constant 0 : i32
    return %arg0, %arg1 : i32, i32
  }
}

module attributes {stable_mosaic.version = 11 : i64} {
  func.func @_mlp_bn_kernel(%arg0: memref<2x4xf32, #tpu.memory_space<vmem>>, %arg1: memref<4x32xf32, #tpu.memory_space<vmem>>, %arg2: memref<1x32xf32, #tpu.memory_space<vmem>>, %arg3: memref<1x32xf32, #tpu.memory_space<vmem>>, %arg4: memref<1x32xf32, #tpu.memory_space<vmem>>, %arg5: memref<32x16xf32, #tpu.memory_space<vmem>>, %arg6: memref<1x16xf32, #tpu.memory_space<vmem>>, %arg7: memref<2x16xf32, #tpu.memory_space<vmem>>) attributes {dimension_semantics = [], scalar_prefetch = 0 : i64, scratch_operands = 0 : i64, tpu.core_type = #tpu.core_type<tc>} {
    %c0 = arith.constant 0 : index
    %c0_0 = arith.constant 0 : index
    %0 = vector.load %arg0[%c0, %c0_0] : memref<2x4xf32, #tpu.memory_space<vmem>>, vector<2x4xf32>
    %c0_1 = arith.constant 0 : index
    %c0_2 = arith.constant 0 : index
    %1 = vector.load %arg1[%c0_1, %c0_2] : memref<4x32xf32, #tpu.memory_space<vmem>>, vector<4x32xf32>
    %cst = arith.constant dense<0.000000e+00> : vector<2x32xf32>
    %2 = tpu.matmul %0, %1, %cst {dimension_numbers = #tpu.dot_dimension_numbers<[1], [0], [0], [1], [0, 0, 1, 1], [], []>} : vector<2x4xf32>, vector<4x32xf32>, vector<2x32xf32> -> vector<2x32xf32>
    %c0_3 = arith.constant 0 : index
    %c0_4 = arith.constant 0 : index
    %3 = vector.load %arg2[%c0_3, %c0_4] : memref<1x32xf32, #tpu.memory_space<vmem>>, vector<1x32xf32>
    %4 = vector.broadcast %3 : vector<1x32xf32> to vector<2x32xf32>
    %5 = arith.addf %2, %4 : vector<2x32xf32>
    %cst_5 = arith.constant dense<0.000000e+00> : vector<32xf32>
    %6 = vector.multi_reduction <add>, %5, %cst_5 [0] : vector<2x32xf32> to vector<32xf32>
    %7 = vector.shape_cast %6 : vector<32xf32> to vector<1x32xf32>
    %cst_6 = arith.constant 2.000000e+00 : f32
    %8 = vector.broadcast %cst_6 : f32 to vector<1x32xf32>
    %9 = arith.divf %7, %8 : vector<1x32xf32>
    %10 = vector.broadcast %9 : vector<1x32xf32> to vector<2x32xf32>
    %11 = arith.subf %5, %10 : vector<2x32xf32>
    %12 = arith.mulf %11, %11 : vector<2x32xf32>
    %cst_7 = arith.constant dense<0.000000e+00> : vector<32xf32>
    %13 = vector.multi_reduction <add>, %12, %cst_7 [0] : vector<2x32xf32> to vector<32xf32>
    %14 = vector.shape_cast %13 : vector<32xf32> to vector<1x32xf32>
    %cst_8 = arith.constant 2.000000e+00 : f32
    %15 = vector.broadcast %cst_8 : f32 to vector<1x32xf32>
    %16 = arith.divf %14, %15 : vector<1x32xf32>
    %17 = vector.broadcast %9 : vector<1x32xf32> to vector<2x32xf32>
    %18 = arith.subf %5, %17 : vector<2x32xf32>
    %cst_9 = arith.constant 9.99999974E-6 : f32
    %19 = vector.broadcast %cst_9 : f32 to vector<1x32xf32>
    %20 = arith.addf %16, %19 : vector<1x32xf32>
    %21 = math.rsqrt %20 : vector<1x32xf32>
    %22 = vector.broadcast %21 : vector<1x32xf32> to vector<2x32xf32>
    %23 = arith.mulf %18, %22 : vector<2x32xf32>
    %c0_10 = arith.constant 0 : index
    %c0_11 = arith.constant 0 : index
    %24 = vector.load %arg3[%c0_10, %c0_11] : memref<1x32xf32, #tpu.memory_space<vmem>>, vector<1x32xf32>
    %25 = vector.broadcast %24 : vector<1x32xf32> to vector<2x32xf32>
    %26 = arith.mulf %23, %25 : vector<2x32xf32>
    %c0_12 = arith.constant 0 : index
    %c0_13 = arith.constant 0 : index
    %27 = vector.load %arg4[%c0_12, %c0_13] : memref<1x32xf32, #tpu.memory_space<vmem>>, vector<1x32xf32>
    %28 = vector.broadcast %27 : vector<1x32xf32> to vector<2x32xf32>
    %29 = arith.addf %26, %28 : vector<2x32xf32>
    %cst_14 = arith.constant 0.000000e+00 : f32
    %30 = vector.broadcast %cst_14 : f32 to vector<2x32xf32>
    %31 = arith.maximumf %29, %30 : vector<2x32xf32>
    %c0_15 = arith.constant 0 : index
    %c0_16 = arith.constant 0 : index
    %32 = vector.load %arg5[%c0_15, %c0_16] : memref<32x16xf32, #tpu.memory_space<vmem>>, vector<32x16xf32>
    %cst_17 = arith.constant dense<0.000000e+00> : vector<2x16xf32>
    %33 = tpu.matmul %31, %32, %cst_17 {dimension_numbers = #tpu.dot_dimension_numbers<[1], [0], [0], [1], [0, 0, 1, 1], [], []>} : vector<2x32xf32>, vector<32x16xf32>, vector<2x16xf32> -> vector<2x16xf32>
    %c0_18 = arith.constant 0 : index
    %c0_19 = arith.constant 0 : index
    %34 = vector.load %arg6[%c0_18, %c0_19] : memref<1x16xf32, #tpu.memory_space<vmem>>, vector<1x16xf32>
    %35 = vector.broadcast %34 : vector<1x16xf32> to vector<2x16xf32>
    %36 = arith.addf %33, %35 : vector<2x16xf32>
    %c0_20 = arith.constant 0 : index
    %c0_21 = arith.constant 0 : index
    %37 = vector.load %arg7[%c0_20, %c0_21] : memref<2x16xf32, #tpu.memory_space<vmem>>, vector<2x16xf32>
    tpu.vector_store %arg7[%c0_20, %c0_21], %36 {strides = array<i32>} : memref<2x16xf32, #tpu.memory_space<vmem>>, vector<2x16xf32>,
    return
  }
}

</mosaic_0001>

<bundles_post_ra>
// kernel: nonlinear_neck_v2.2
= control target key start
LH: loop header
LB: loop body
LE: loop exit
PB: predicated region body
PF: predicated region fallthrough
CT: control target
= control target key end

     0   :  { %vm23_vm0 = vcmask 1043456   ;;  %vm12_vm1 = vcmask 25600   ;;  %v65_v10 = vmov 0.0   ;;  %v36_v11 = vlaneseq  ;;  %s100_s0 = inlined_call_operand.vmem [shape: f32[2,4,256], index: 0, kind: input, shape index: {}]   ;;  %s101_s1 = inlined_call_operand.vmem [shape: f32[2,4], index: 1, kind: output, shape index: {}]  }
   0x1   :  { %v14_v0 = vld [vmem:[%s100_s0] sm:$0xff]  ;;  %v15_v1 = vld [vmem:[%s100_s0 + $0x8] sm:$0xff]  ;;  %13 = vst.msk [vmem:[%s101_s1] sm:$0x3] %vm12_vm1, %v65_v10  ;;  %vm46_vm2 = vcmask 1041409  }
   0x2   :  { %v19_v2 = vcombine.high %v14_v0, %v14_v0  ;;  %v24_v3 = vsel %vm23_vm0, %v14_v0, 0.0  ;;  %v20_v4 = vcombine.high %v15_v1, %v15_v1  ;;  %v29_v6 = vsel %vm23_vm0, %v15_v1, 0.0 }
   0x3   :  { %v37_v12 = vand.u32 127, %v36_v11  ;;  %v39_v13 = vshrl.u32 %v36_v11, 7 }
   0x4   :  { %v25_v5 = vsel %vm23_vm0, %v19_v2, 0.0  ;;  %v30_v7 = vsel %vm23_vm0, %v20_v4, 0.0 }
   0x5   :  { %v26_v8 = vadd.f32 %v25_v5, %v24_v3  ;;  %v31_v9 = vadd.f32 %v30_v7, %v29_v6  ;;  %v40_v15 = vsub.s32 %v37_v12, %v39_v13 }
   0x7   :  { %27 = vadd.xlane.f32.xlu0 %v26_v8 }
   0x8   :  { %v16_v18 = vld [vmem:[%s101_s1] sm:$0x3] }
   0xb   :  { %32 = vadd.xlane.f32.xlu0 %v31_v9 }
  0x90   :  { %v28_v14 = vpop.xlane.xlu0 %27 }
  0x91   :  { %v41_v17 = vrot.slane %v28_v14, %v40_v15 }
  0x94   :  { %v33_v16 = vpop.xlane.xlu0 %32 }
  0x95   :  { %v45_v19 = vrot.slane %v33_v16, %v40_v15 }
  0x97   :  { %v47_v20 = vsel %vm46_vm2, %v45_v19, %v41_v17 }
  0x98   :  { %v49_v21 = vadd.f32 %v47_v20, %v16_v18 }
  0x9a   :  { %51 = vst.msk [vmem:[%s101_s1] sm:$0x3] %vm12_vm1, %v49_v21 }
  0xa1   :  { %v55_v22 = vld [vmem:[%s101_s1] sm:$0x3] }
  0xa2   :  { %v56_v23 = vmul.f32 0.00390625, %v55_v22 }
  0xa4   :  { %57 = vst.msk [vmem:[%s101_s1] sm:$0x3] %vm12_vm1, %v56_v23 }

// kernel: nonlinear_neck_v2.3
= control target key start
LH: loop header
LB: loop body
LE: loop exit
PB: predicated region body
PF: predicated region fallthrough
CT: control target
= control target key end

     0   :  { %vm40_vm0 = vcmask 1043456   ;;  %vm36_vm1 = vcmask 31744   ;;  %v312_v1 = vmov 0.0   ;;  %vm313_vm2 = vmmov 0   ;;  %s388_s0 = inlined_call_operand.vmem [shape: f32[2,4], index: 0, kind: input, shape index: {}]   ;;  %s389_s1 = inlined_call_operand.vmem [shape: f32[4,32], index: 1, kind: input, shape index: {}]   ;;  %s390_s2 = inlined_call_operand.vmem [shape: f32[1,32], index: 2, kind: input, shape index: {}]   ;;  %s391_s3 = inlined_call_operand.vmem [shape: f32[1,32], index: 3, kind: input, shape index: {}]   ;;  %s392_s4 = inlined_call_operand.vmem [shape: f32[1,32], index: 4, kind: input, shape index: {}]   ;;  %s393_s5 = inlined_call_operand.vmem [shape: f32[32,16], index: 5, kind: input, shape index: {}]   ;;  %s394_s6 = inlined_call_operand.vmem [shape: f32[1,16], index: 6, kind: input, shape index: {}]   ;;  %s395_s7 = inlined_call_operand.hbm [shape: f32[2,16], index: 7, kind: output, shape index: {}]  }
   0x1   :  { %v28_v0 = vld [vmem:[%s389_s1] sm:$0xf]  ;;  %269 = vmatprep.subr.mxu0 %v312_v1  ;;  %271 = vmatprep.mubr.msk.f32.mxu0 %vm313_vm2, %v312_v1 }
   0x2   :  { %v27_v2 = vld [vmem:[%s388_s0] sm:$0x3] }
   0x3   :  { %12 = vsyncpa [#allocation3], 0  ;;  %270 = vmatpush3.msk.msra.mxu0 %vm40_vm0, %v28_v0  ;;  %274 = vmatprep.subr.mxu1 %v312_v1  ;;  %v157_v3 = vld [vmem:[%s393_s5 + $0x18] sm:$0xff]  ;;  %v156_v4 = vld [vmem:[%s393_s5 + $0x10] sm:$0xff]  ;;  %vm114_vm3 = vcmask 254976   ;;  %vm165_vm4 = vcmask 261120  }
   0x4   :  { %272 = vmatmul.mubr.msk.f32.vlgmr.msra.gmra.mxu0 %vm36_vm1, %v27_v2  ;;  %282 = vmatprep.mubr.msk.f32.mxu1 %vm313_vm2, %v312_v1  ;;  %v155_v5 = vld [vmem:[%s393_s5 + $0x8] sm:$0xff]  ;;  %v154_v6 = vld [vmem:[%s393_s5] sm:$0xff]  ;;  %s314_s17 = smov [#allocation2]   ;;  %vm239_vm5 = vcmask 123904  }
   0x5   :  { %275 = vmatpush3.msra.mxu1 %v157_v3  ;;  %v255_v7 = vld [vmem:[%s390_s2] ss:$0 sm:$0xff]  ;;  %s247_s18 = sshll.u32 %s314_s17, 4  ;;  %s248_s18 = int_to_ptr.vmem [resolvable:$true] %s247_s18 }
   0x6   :  { %276 = vmatprep.subr.mxu1 %v312_v1  ;;  %v258_v31 = vld [vmem:[%s391_s3] ss:$0 sm:$0xff]  ;;  %s290_s3 = scalar_lea.vmem %s248_s18, 32  ;;  %p295_p1 = scmp.lt.s32.totalorder %s248_s18, %s248_s18 }
   0x7   :  { %277 = vmatpush3.msra.mxu1 %v156_v4  ;;  %v259_v33 = vld [vmem:[%s392_s4] ss:$0 sm:$0xff]  ;;  %p291_p0 = scmp.ne.s32.totalorder %s248_s18, %s290_s3  ;;  %p296_p2 = scmp.lt.s32.totalorder %s290_s3, %s290_s3 }
   0x8   :  { %278 = vmatprep.subr.mxu1 %v312_v1  ;;  %v260_v37 = vld [vmem:[%s394_s6] ss:$0 sm:$0xff] }
   0x9   :  { %279 = vmatpush3.msra.mxu1 %v155_v5  ;;  %p297_p3 = por %p296_p2, %p295_p1 }
   0xa   :  { %280 = vmatprep.subr.mxu1 %v312_v1 }
   0xb   :  { %281 = vmatpush3.msra.mxu1 %v154_v6  ;;  %p298_p4 = pnand %p297_p3, %p291_p0 }
  0xc4   :  { %v110_v8 = vpop.f32.mrf.mxu0 }
  0xc5   :  { %v111_v9 = vadd.f32 %v255_v7, %v110_v8 }
  0xc6   :  { %v273_v10 = vpop.f32.mrf.mxu0 }
  0xc7   :  { %v115_v11 = vsel %vm114_vm3, %v111_v9, 0.0 }
  0xc8   :  { %v116_v12 = vrot.slane %v115_v11, 4 }
  0xca   :  { %v117_v13 = vadd.f32 %v116_v12, %v115_v11 }
  0xcc   :  { %v118_v14 = vrot.slane %v117_v13, 2 }
  0xce   :  { %v119_v15 = vadd.f32 %v118_v14, %v117_v13 }
  0xd0   :  { %v120_v16 = vrot.slane %v119_v15, 1 }
  0xd2   :  { %v121_v17 = vadd.f32 %v120_v16, %v119_v15 }
  0xd4   :  { %v123_v18 = vmul.f32 0.5, %v121_v17 }
  0xd6   :  { %v124_v19 = vsub.f32 %v111_v9, %v123_v18 }
  0xd8   :  { %v125_v20 = vmul.f32 %v124_v19, %v124_v19 }
  0xda   :  { %v126_v21 = vsel %vm114_vm3, %v125_v20, 0.0 }
  0xdb   :  { %v127_v22 = vrot.slane %v126_v21, 4 }
  0xdd   :  { %v128_v23 = vadd.f32 %v127_v22, %v126_v21 }
  0xdf   :  { %v129_v24 = vrot.slane %v128_v23, 2 }
  0xe1   :  { %v130_v25 = vadd.f32 %v129_v24, %v128_v23 }
  0xe3   :  { %v131_v26 = vrot.slane %v130_v25, 1 }
  0xe5   :  { %v132_v27 = vadd.f32 %v131_v26, %v130_v25 }
  0xe7   :  { %v133_v28 = vmul.f32 0.5, %v132_v27 }
  0xe9   :  { %v134_v29 = vadd.f32 1e-05, %v133_v28 }
  0xeb   :  { %288 = vrsqrt.f32 %v134_v29 }
  0xf8   :  { %v289_v30 = vpop.eup %288 }
  0xf9   :  { %v136_v32 = vmul.f32 %v289_v30, %v124_v19 }
  0xfb   :  { %v144_v34 = vmul.f32 %v258_v31, %v136_v32 }
  0xfd   :  { %v152_v35 = vadd.f32 %v259_v33, %v144_v34 }
  0xff   :  { %v153_v36 = vmax.f32 %v152_v35, 0.0 }
 0x101   :  { %283 = vmatmul.mubr.msk.f32.vlgmr.msra.gmra.mxu1 %vm165_vm4, %v153_v36 }
 0x1c1   :  { %v235_v38 = vpop.f32.mrf.mxu1 }
 0x1c2   :  { %v236_v39 = vadd.f32 %v260_v37, %v235_v38 }
 0x1c3   :  { %v284_v40 = vpop.f32.mrf.mxu1 }
 0x1c4   :  { %240 = vst.msk [vmem:[#allocation2] sm:$0x3] %vm239_vm5, %v236_v39 }
 0x1c5   :  { %301 = shalt.err (!%p298_p4)
}
 0x1c6   :  { %250 = dma.vmem_to_hbm [thread:$0]  %s248_s18, 32, %s395_s7, [#allocation3]  }
 0x1c7   :  { %310 = dma.done.wait [#allocation3], 32  }
 0x1c8   :  { %311 = vsyncadd [#allocation3], 4294967264 }
 0x1c9   :  { %254 = vsyncpa [#allocation3], 1 }

</bundles_post_ra>
